<compile_context>
chip_gen: v6e
topology: v6e:2x2x1
jax: 0.10.0
libtpu: 0.0.40
codegen_flags: <defaults>
</compile_context>

<pallas_src>
import jax
import jax.numpy as jnp
from jax.experimental import pallas as pl
from jax.experimental.pallas import tpu as pltpu


def _round_up(x, m):
    return ((x + m - 1) // m) * m


def _tile_defaults(device_kind):
    """(tm_target, tv_target, target_row_blocks, vmem_limit_bytes) per TPU gen."""
    k = device_kind.lower()
    if "v6" in k:                       # v6e: ridge ~680 flops/byte, 128 MiB VMEM
        return 1024, 2048, 1, 64 << 20
    if "v5" in k:                       # v5e/v5p: ridge ~240 flops/byte
        return 384, 2048, 1, 64 << 20
    if "v7" in k or "7x" in k:          # v7x: ridge ~310, only 64 MiB VMEM, 2 TCs
        return 512, 2048, 2, 48 << 20
    return 512, 1024, 1, 48 << 20       # unknown: conservative


def _gold_score_kernel(h_ref, w_ref, b_ref, ids_ref, out_ref, m_sc, l_sc, g_sc):
    # h_ref  : (H, tm)   bf16  hidden rows, transposed (lane dim = rows)
    # w_ref  : (tv, H)   bf16  generator weight tile (PyTorch [vocab, hidden] layout)
    # b_ref  : (tv, 1)   f32   bias tile (padded vocab entries hold -1e30)
    # ids_ref: (1, tm)   i32   gold token ids for this row block
    # out_ref: (1, tm)   f32   gold log-prob per row (written on last vocab block)
    # m_sc / l_sc / g_sc : (1, tm) f32 running max / running sum / gold-logit acc
    j = pl.program_id(1)
    tv = w_ref.shape[0]

    @pl.when(j == 0)
    def _init():
        m_sc[...] = jnp.full_like(m_sc, -jnp.inf)
        l_sc[...] = jnp.zeros_like(l_sc)
        g_sc[...] = jnp.zeros_like(g_sc)

    # (tv, tm) logits for this vocab tile; bf16 MXU operands, f32 accumulation.
    logits = jnp.dot(w_ref[...], h_ref[...],
                     preferred_element_type=jnp.float32) + b_ref[...]

    # online logsumexp across vocab tiles (reduction over the sublane axis)
    m_old = m_sc[...]
    m_new = jnp.maximum(m_old, jnp.max(logits, axis=0, keepdims=True))
    alpha = jnp.exp(m_old - m_new)
    l_sc[...] = alpha * l_sc[...] + jnp.sum(jnp.exp(logits - m_new),
                                            axis=0, keepdims=True)
    m_sc[...] = m_new

    # gold-token gather: (tv,1) sublane iota vs (1,tm) tile-local ids, broadcast
    # compare — exactly one global vocab index matches per (real) row.
    local_ids = ids_ref[...] - j * tv                            # (1, tm)
    row_idx = jax.lax.broadcasted_iota(jnp.int32, (tv, 1), 0)    # (tv, 1)
    hit = row_idx == local_ids                                    # (tv, tm)
    g_sc[...] += jnp.sum(jnp.where(hit, logits, 0.0), axis=0, keepdims=True)

    @pl.when(j == pl.num_programs(1) - 1)
    def _finalize():
        out_ref[...] = g_sc[...] - (m_sc[...] + jnp.log(l_sc[...]))


def gold_scorer_hidden(hidden_st, gold_ids, w_gen, b_gen, *, tm=None, tv=None):
    """Gold score (sum of gold-token log-probs over time) per batch element.

    hidden_st : [seq, batch, hidden] float  decoder hidden states (time-major)
    gold_ids  : [seq, batch]         int    gold token ids in [0, vocab)
    w_gen     : [vocab, hidden]      float  generator weight (PyTorch Linear layout)
    b_gen     : [vocab]              float  generator bias
    returns   : [batch]              float32 gold log-likelihood per sentence
    """
    S, B, H = hidden_st.shape
    V, Hw = w_gen.shape
    assert Hw == H, "generator weight must be [vocab, hidden]"
    M = S * B

    try:
        device_kind = jax.devices()[0].device_kind
    except Exception:  # pragma: no cover - defensive
        device_kind = ""
    tm_target, tv_target, target_blocks, vmem_limit = _tile_defaults(device_kind)

    Mp128 = _round_up(M, 128)
    V128 = _round_up(V, 128)

    # Row tile: minimize the number of row blocks (W is re-streamed per row
    # block).  If all rows fit in `target_blocks` blocks of tm_target, split
    # them evenly into exactly that many blocks (1 block => W read once;
    # 2 blocks on v7x => both TensorCores busy).  Otherwise use tm_target.
    if tm is None:
        if Mp128 <= target_blocks * tm_target:
            nb = max(1, min(target_blocks, Mp128 // 128))
            tm = _round_up(-(-Mp128 // nb), 128)
        else:
            tm = tm_target
    tm = _round_up(min(tm, Mp128), 128)

    if tv is None:
        tv = tv_target
    tv = _round_up(min(tv, V128), 128)

    Mp = _round_up(M, tm)
    Vp = _round_up(V, tv)
    n_row_blocks = Mp // tm
    n_voc_blocks = Vp // tv

    # Rows along the lane dimension: hidden -> (H, Mp), bf16 for the MXU.
    h_t = jnp.pad(hidden_st.reshape(M, H).T.astype(jnp.bfloat16),
                  ((0, 0), (0, Mp - M)))
    # Gold ids, lane-dense (n_row_blocks, 1, tm).
    ids = jnp.pad(gold_ids.reshape(M).astype(jnp.int32), (0, Mp - M))
    ids = ids.reshape(n_row_blocks, 1, tm)
    # Generator weight in bf16; padded vocab rows are zero.
    w_p = jnp.pad(w_gen.astype(jnp.bfloat16), ((0, Vp - V), (0, 0)))
    # Bias as a column; padded vocab entries get -1e30 so exp() kills them.
    b_p = jnp.pad(b_gen.astype(jnp.float32), (0, Vp - V),
                  constant_values=-1e30).reshape(Vp, 1)

    cost = pl.CostEstimate(
        flops=2 * Mp * H * Vp,
        transcendentals=Mp * Vp + Mp * (n_voc_blocks + 1),
        bytes_accessed=(h_t.size * 2                               # hidden (bf16)
                        + n_row_blocks * (w_p.size * 2             # W per row block
                                          + b_p.size * 4)          # bias per row block
                        + ids.size * 4 + Mp * 4),
    )

    gold_lp = pl.pallas_call(
        _gold_score_kernel,
        out_shape=jax.ShapeDtypeStruct((n_row_blocks, 1, tm), jnp.float32),
        grid_spec=pltpu.PrefetchScalarGridSpec(
            num_scalar_prefetch=0,
            grid=(n_row_blocks, n_voc_blocks),
            in_specs=[
                pl.BlockSpec((H, tm), lambda i, j: (0, i)),           # hidden^T (i only)
                pl.BlockSpec((tv, H), lambda i, j: (j, 0)),           # W tile
                pl.BlockSpec((tv, 1), lambda i, j: (j, 0)),           # bias tile
                pl.BlockSpec((None, 1, tm), lambda i, j: (i, 0, 0)),  # gold ids
            ],
            out_specs=pl.BlockSpec((None, 1, tm), lambda i, j: (i, 0, 0)),
            scratch_shapes=[pltpu.VMEM((1, tm), jnp.float32)] * 3,
        ),
        compiler_params=pltpu.CompilerParams(
            dimension_semantics=("parallel", "arbitrary"),
            vmem_limit_bytes=vmem_limit,
        ),
        cost_estimate=cost,
    )(h_t, w_p, b_p, ids)

    # Drop row padding, restore [seq, batch], sum over time (plain-JAX glue).
    return gold_lp.reshape(Mp)[:M].reshape(S, B).sum(axis=0)


# TODO(synk): corpus sharding / translator construction / beam-search driving in
# GoldHidden.__call__ has no tensor semantics and therefore no Pallas equivalent;
# only the gold-scoring math on hidden_state is implemented here.


if __name__ == "__main__":
    SEQ, BATCH, HIDDEN, VOCAB = 8, 2, 32, 128

    key = jax.random.PRNGKey(0)
    k_h, k_w, k_b, k_ids = jax.random.split(key, 4)

    hidden_st = jax.random.normal(k_h, (SEQ, BATCH, HIDDEN), dtype=jnp.float32)
    w_gen = (jax.random.normal(k_w, (VOCAB, HIDDEN), dtype=jnp.float32)
             * (1.0 / jnp.sqrt(HIDDEN)))            # PyTorch [vocab, hidden] layout
    b_gen = jax.random.normal(k_b, (VOCAB,), dtype=jnp.float32) * 0.01
    gold_ids = jax.random.randint(k_ids, (SEQ, BATCH), 0, VOCAB, dtype=jnp.int32)

    out = gold_scorer_hidden(hidden_st, gold_ids, w_gen, b_gen)
    out = jax.block_until_ready(out)

    # reference (plain JAX) using the same bf16 matmul operands as the kernel
    h_bf = hidden_st.reshape(-1, HIDDEN).astype(jnp.bfloat16)
    w_bf = w_gen.astype(jnp.bfloat16)
    logits_ref = jnp.dot(h_bf, w_bf.T, preferred_element_type=jnp.float32) + b_gen
    logp_ref = jax.nn.log_softmax(logits_ref, axis=-1)
    gold_lp_ref = jnp.take_along_axis(
        logp_ref, gold_ids.reshape(-1, 1), axis=-1
    ).reshape(SEQ, BATCH)
    ref = gold_lp_ref.sum(axis=0)

    assert out.shape == (BATCH,)
    assert jnp.allclose(out, ref, atol=1e-2, rtol=1e-3), (out, ref)
    print("KERNEL_OK")
</pallas_src>

<mosaic_0001>
module attributes {stable_mosaic.version = 11 : i64} {
  func.func @_gold_score_kernel(%arg0: i32, %arg1: i32, %arg2: memref<32x128xbf16, #tpu.memory_space<vmem>>, %arg3: memref<128x32xbf16, #tpu.memory_space<vmem>>, %arg4: memref<128x1xf32, #tpu.memory_space<vmem>>, %arg5: memref<1x1x128xi32, #tpu.memory_space<vmem>>, %arg6: memref<1x1x128xf32, #tpu.memory_space<vmem>>, %arg7: memref<1x128xf32, #tpu.memory_space<vmem>>, %arg8: memref<1x128xf32, #tpu.memory_space<vmem>>, %arg9: memref<1x128xf32, #tpu.memory_space<vmem>>) attributes {dimension_semantics = [#tpu.dimension_semantics<parallel>, #tpu.dimension_semantics<arbitrary>], iteration_bounds = array<i64: 1, 1>, scalar_prefetch = 0 : i64, scratch_operands = 3 : i64, tpu.core_type = #tpu.core_type<tc>, window_params = [{transform_indices = @transform_0, window_bounds = array<i64: 32, 128>}, {transform_indices = @transform_1, window_bounds = array<i64: 128, 32>}, {transform_indices = @transform_2, window_bounds = array<i64: 128, 1>}, {transform_indices = @transform_3, window_bounds = array<i64: 1, 1, 128>}, {transform_indices = @transform_4, window_bounds = array<i64: 1, 1, 128>}]} {
    %c0_i32 = arith.constant 0 : i32
    %0 = arith.cmpi eq, %arg1, %c0_i32 : i32
    %1 = arith.extui %0 : i1 to i32
    %c0_i32_0 = arith.constant 0 : i32
    %2 = arith.cmpi ne, %1, %c0_i32_0 : i32
    scf.if %2 {
      %cst_27 = arith.constant 0xFF800000 : f32
      %44 = vector.broadcast %cst_27 : f32 to vector<1x128xf32>
      %c0_28 = arith.constant 0 : index
      %c0_29 = arith.constant 0 : index
      %45 = vector.load %arg7[%c0_28, %c0_29] : memref<1x128xf32, #tpu.memory_space<vmem>>, vector<1x128xf32>
      tpu.vector_store %arg7[%c0_28, %c0_29], %44 {strides = array<i32>} : memref<1x128xf32, #tpu.memory_space<vmem>>, vector<1x128xf32>,
      %cst_30 = arith.constant 0.000000e+00 : f32
      %46 = vector.broadcast %cst_30 : f32 to vector<1x128xf32>
      %c0_31 = arith.constant 0 : index
      %c0_32 = arith.constant 0 : index
      %47 = vector.load %arg8[%c0_31, %c0_32] : memref<1x128xf32, #tpu.memory_space<vmem>>, vector<1x128xf32>
      tpu.vector_store %arg8[%c0_31, %c0_32], %46 {strides = array<i32>} : memref<1x128xf32, #tpu.memory_space<vmem>>, vector<1x128xf32>,
      %cst_33 = arith.constant 0.000000e+00 : f32
      %48 = vector.broadcast %cst_33 : f32 to vector<1x128xf32>
      %c0_34 = arith.constant 0 : index
      %c0_35 = arith.constant 0 : index
      %49 = vector.load %arg9[%c0_34, %c0_35] : memref<1x128xf32, #tpu.memory_space<vmem>>, vector<1x128xf32>
      tpu.vector_store %arg9[%c0_34, %c0_35], %48 {strides = array<i32>} : memref<1x128xf32, #tpu.memory_space<vmem>>, vector<1x128xf32>,
    } else {
    }
    %c0 = arith.constant 0 : index
    %c0_1 = arith.constant 0 : index
    %3 = vector.load %arg3[%c0, %c0_1] : memref<128x32xbf16, #tpu.memory_space<vmem>>, vector<128x32xbf16>
    %c0_2 = arith.constant 0 : index
    %c0_3 = arith.constant 0 : index
    %4 = vector.load %arg2[%c0_2, %c0_3] : memref<32x128xbf16, #tpu.memory_space<vmem>>, vector<32x128xbf16>
    %cst = arith.constant dense<0.000000e+00> : vector<128x128xf32>
    %5 = tpu.matmul %3, %4, %cst {dimension_numbers = #tpu.dot_dimension_numbers<[1], [0], [0], [1], [0, 0, 1, 1], [], []>} : vector<128x32xbf16>, vector<32x128xbf16>, vector<128x128xf32> -> vector<128x128xf32>
    %c0_4 = arith.constant 0 : index
    %c0_5 = arith.constant 0 : index
    %6 = vector.load %arg4[%c0_4, %c0_5] : memref<128x1xf32, #tpu.memory_space<vmem>>, vector<128x1xf32>
    %7 = vector.broadcast %6 : vector<128x1xf32> to vector<128x128xf32>
    %8 = arith.addf %5, %7 : vector<128x128xf32>
    %c0_6 = arith.constant 0 : index
    %c0_7 = arith.constant 0 : index
    %9 = vector.load %arg7[%c0_6, %c0_7] : memref<1x128xf32, #tpu.memory_space<vmem>>, vector<1x128xf32>
    %cst_8 = arith.constant dense<0xFF800000> : vector<128xf32>
    %10 = vector.multi_reduction <maximumf>, %8, %cst_8 [0] : vector<128x128xf32> to vector<128xf32>
    %11 = vector.shape_cast %10 : vector<128xf32> to vector<1x128xf32>
    %12 = arith.maximumf %9, %11 : vector<1x128xf32>
    %13 = arith.subf %9, %12 : vector<1x128xf32>
    %14 = math.exp %13 : vector<1x128xf32>
    %c0_9 = arith.constant 0 : index
    %c0_10 = arith.constant 0 : index
    %15 = vector.load %arg8[%c0_9, %c0_10] : memref<1x128xf32, #tpu.memory_space<vmem>>, vector<1x128xf32>
    %16 = arith.mulf %14, %15 : vector<1x128xf32>
    %17 = vector.broadcast %12 : vector<1x128xf32> to vector<128x128xf32>
    %18 = arith.subf %8, %17 : vector<128x128xf32>
    %19 = math.exp %18 : vector<128x128xf32>
    %cst_11 = arith.constant dense<0.000000e+00> : vector<128xf32>
    %20 = vector.multi_reduction <add>, %19, %cst_11 [0] : vector<128x128xf32> to vector<128xf32>
    %21 = vector.shape_cast %20 : vector<128xf32> to vector<1x128xf32>
    %22 = arith.addf %16, %21 : vector<1x128xf32>
    %c0_12 = arith.constant 0 : index
    %c0_13 = arith.constant 0 : index
    %23 = vector.load %arg8[%c0_12, %c0_13] : memref<1x128xf32, #tpu.memory_space<vmem>>, vector<1x128xf32>
    tpu.vector_store %arg8[%c0_12, %c0_13], %22 {strides = array<i32>} : memref<1x128xf32, #tpu.memory_space<vmem>>, vector<1x128xf32>,
    %c0_14 = arith.constant 0 : index
    %c0_15 = arith.constant 0 : index
    %24 = vector.load %arg7[%c0_14, %c0_15] : memref<1x128xf32, #tpu.memory_space<vmem>>, vector<1x128xf32>
    tpu.vector_store %arg7[%c0_14, %c0_15], %12 {strides = array<i32>} : memref<1x128xf32, #tpu.memory_space<vmem>>, vector<1x128xf32>,
    %c0_16 = arith.constant 0 : index
    %c0_17 = arith.constant 0 : index
    %c0_18 = arith.constant 0 : index
    %25 = vector.load %arg5[%c0_16, %c0_17, %c0_18] : memref<1x1x128xi32, #tpu.memory_space<vmem>>, vector<1x1x128xi32>
    %26 = vector.shape_cast %25 : vector<1x1x128xi32> to vector<1x128xi32>
    %c128_i32 = arith.constant 128 : i32
    %27 = arith.muli %arg1, %c128_i32 : i32
    %28 = vector.broadcast %27 : i32 to vector<1x128xi32>
    %29 = arith.subi %26, %28 : vector<1x128xi32>
    %30 = tpu.iota {dimensions = array<i32: 0>} : vector<128x1xi32>
    %31 = vector.broadcast %30 : vector<128x1xi32> to vector<128x128xi32>
    %32 = vector.broadcast %29 : vector<1x128xi32> to vector<128x128xi32>
    %33 = arith.cmpi eq, %31, %32 : vector<128x128xi32>
    %c0_19 = arith.constant 0 : index
    %c0_20 = arith.constant 0 : index
    %34 = vector.load %arg9[%c0_19, %c0_20] : memref<1x128xf32, #tpu.memory_space<vmem>>, vector<1x128xf32>
    %cst_21 = arith.constant 0.000000e+00 : f32
    %35 = vector.broadcast %cst_21 : f32 to vector<128x128xf32>
    %36 = arith.select %33, %8, %35 : vector<128x128xi1>, vector<128x128xf32>
    %cst_22 = arith.constant dense<0.000000e+00> : vector<128xf32>
    %37 = vector.multi_reduction <add>, %36, %cst_22 [0] : vector<128x128xf32> to vector<128xf32>
    %38 = vector.shape_cast %37 : vector<128xf32> to vector<1x128xf32>
    %39 = arith.addf %34, %38 : vector<1x128xf32>
    %c0_23 = arith.constant 0 : index
    %c0_24 = arith.constant 0 : index
    %40 = vector.load %arg9[%c0_23, %c0_24] : memref<1x128xf32, #tpu.memory_space<vmem>>, vector<1x128xf32>
    tpu.vector_store %arg9[%c0_23, %c0_24], %39 {strides = array<i32>} : memref<1x128xf32, #tpu.memory_space<vmem>>, vector<1x128xf32>,
    %c0_i32_25 = arith.constant 0 : i32
    %41 = arith.cmpi eq, %arg1, %c0_i32_25 : i32
    %42 = arith.extui %41 : i1 to i32
    %c0_i32_26 = arith.constant 0 : i32
    %43 = arith.cmpi ne, %42, %c0_i32_26 : i32
    scf.if %43 {
      %c0_27 = arith.constant 0 : index
      %c0_28 = arith.constant 0 : index
      %44 = vector.load %arg9[%c0_27, %c0_28] : memref<1x128xf32, #tpu.memory_space<vmem>>, vector<1x128xf32>
      %c0_29 = arith.constant 0 : index
      %c0_30 = arith.constant 0 : index
      %45 = vector.load %arg7[%c0_29, %c0_30] : memref<1x128xf32, #tpu.memory_space<vmem>>, vector<1x128xf32>
      %c0_31 = arith.constant 0 : index
      %c0_32 = arith.constant 0 : index
      %46 = vector.load %arg8[%c0_31, %c0_32] : memref<1x128xf32, #tpu.memory_space<vmem>>, vector<1x128xf32>
      %47 = math.log %46 : vector<1x128xf32>
      %48 = arith.addf %45, %47 : vector<1x128xf32>
      %49 = arith.subf %44, %48 : vector<1x128xf32>
      %c0_33 = arith.constant 0 : index
      %c0_34 = arith.constant 0 : index
      %c0_35 = arith.constant 0 : index
      %50 = vector.load %arg6[%c0_33, %c0_34, %c0_35] : memref<1x1x128xf32, #tpu.memory_space<vmem>>, vector<1x1x128xf32>
      %51 = vector.shape_cast %50 : vector<1x1x128xf32> to vector<1x128xf32>
      %52 = vector.shape_cast %49 : vector<1x128xf32> to vector<1x1x128xf32>
      tpu.vector_store %arg6[%c0_33, %c0_34, %c0_35], %52 {strides = array<i32>} : memref<1x1x128xf32, #tpu.memory_space<vmem>>, vector<1x1x128xf32>,
    } else {
    }
    return
  }
  func.func @transform_0(%arg0: i32, %arg1: i32) -> (i32, i32) {
    %c0_i32 = arith.constant 0 : i32
    %c0_i32_0 = arith.constant 0 : i32
    return %c0_i32, %arg0 : i32, i32
  }
  func.func @transform_1(%arg0: i32, %arg1: i32) -> (i32, i32) {
    %c0_i32 = arith.constant 0 : i32
    %c0_i32_0 = arith.constant 0 : i32
    return %arg1, %c0_i32 : i32, i32
  }
  func.func @transform_2(%arg0: i32, %arg1: i32) -> (i32, i32) {
    %c0_i32 = arith.constant 0 : i32
    %c0_i32_0 = arith.constant 0 : i32
    return %arg1, %c0_i32 : i32, i32
  }
  func.func @transform_3(%arg0: i32, %arg1: i32) -> (i32, i32, i32) {
    %c0_i32 = arith.constant 0 : i32
    %c0_i32_0 = arith.constant 0 : i32
    %c0_i32_1 = arith.constant 0 : i32
    return %arg0, %c0_i32, %c0_i32_0 : i32, i32, i32
  }
  func.func @transform_4(%arg0: i32, %arg1: i32) -> (i32, i32, i32) {
    %c0_i32 = arith.constant 0 : i32
    %c0_i32_0 = arith.constant 0 : i32
    %c0_i32_1 = arith.constant 0 : i32
    return %arg0, %c0_i32, %c0_i32_0 : i32, i32, i32
  }
}

</mosaic_0001>

<bundles_post_ra>
// kernel: tpu_custom_call.1
= control target key start
LH: loop header
LB: loop body
LE: loop exit
PB: predicated region body
PF: predicated region fallthrough
CT: control target
= control target key end

     0   :  { %vm194_vm0 = vcmask 261120   ;;  %v655_v7 = vmov 0   ;;  %s925_s0 = inlined_call_operand.vmem [shape: bf16[32,128], index: 0, kind: input, shape index: {}]   ;;  %s926_s1 = inlined_call_operand.vmem [shape: bf16[128,32], index: 1, kind: input, shape index: {}]   ;;  %s927_s2 = inlined_call_operand.vmem [shape: f32[128,1], index: 2, kind: input, shape index: {}]   ;;  %s928_s3 = inlined_call_operand.vmem [shape: s32[1,1,128], index: 3, kind: input, shape index: {}]   ;;  %s929_s4 = inlined_call_operand.hbm [shape: f32[1,1,128], index: 4, kind: output, shape index: {}]  }
   0x1   :  { %v587_v0 = vld [vmem:[%s925_s0 + $0x8] sm:$0xff]   ;;  %v588_v1 = vld [vmem:[%s925_s0] sm:$0xff]   ;;  %v593_v6 = vld [vmem:[%s926_s1 + $0x10] sm:$0xff]   ;;  %586 = vset.pattern.permute.xlu1 %v655_v7  ;;  %585 = vset.pattern.permute.xlu0 %v655_v7 }
   0x2   :  { %557 = vmatprep.subr.bf16.mxu0 %v587_v0  ;;  %577 = vmatprep.subr.bf16.mxu1 %v587_v0  ;;  %v589_v2 = vld [vmem:[%s926_s1] sm:$0xff]   ;;  %v591_v4 = vld [vmem:[%s926_s1 + $0x8] sm:$0xff]   ;;  %v594_v8 = vld [vmem:[%s926_s1 + $0x30] sm:$0xff]  }
   0x3   :  { %558 = vmatpush3.bf16.msra.mxu0 %v587_v0  ;;  %579 = vmatpush3.bf16.msra.mxu1 %v587_v0  ;;  %v590_v3 = vld [vmem:[%s926_s1 + $0x20] sm:$0xff]   ;;  %v592_v5 = vld [vmem:[%s926_s1 + $0x28] sm:$0xff]   ;;  %v48_v9 = vld [vmem:[%s927_s2 + $0x10] sm:$0xff] }
   0x4   :  { %559 = vmatprep.subr.bf16.mxu0 %v588_v1  ;;  %578 = vmatprep.subr.bf16.mxu1 %v588_v1  ;;  %v46_v10 = vld [vmem:[%s927_s2] sm:$0xff]  ;;  %v49_v11 = vld [vmem:[%s927_s2 + $0x18] sm:$0xff]  ;;  %v47_v12 = vld [vmem:[%s927_s2 + $0x8] sm:$0xff] }
   0x5   :  { %561 = vmatprep.mubr.msk.bf16.mxu0 %vm194_vm0, %v589_v2  ;;  %569 = vmatprep.mubr.msk.bf16.mxu1 %vm194_vm0, %v590_v3  ;;  %v595_v13 = vld [vmem:[%s926_s1 + $0x18] sm:$0xff]  }
   0x6   :  { %74 = vperm.xlu1 %586, %v48_v9   ;;  %64 = vperm.xlu0 %585, %v46_v10   ;;  %v596_v14 = vld [vmem:[%s926_s1 + $0x38] sm:$0xff]  }
   0x7   :  { %560 = vmatpush3.bf16.msra.mxu0 %v588_v1  ;;  %580 = vmatpush3.bf16.msra.mxu1 %v588_v1 }
   0xa   :  { %562 = vmatmul.mubr.msk.bf16.vlgmr.msra.gmra.mxu0 %vm194_vm0, %v591_v4  ;;  %570 = vmatmul.mubr.msk.bf16.vlgmr.msra.gmra.mxu1 %vm194_vm0, %v592_v5 }
   0xb   :  { %565 = vmatprep.mubr.msk.bf16.mxu0 %vm194_vm0, %v593_v6  ;;  %573 = vmatprep.mubr.msk.bf16.mxu1 %vm194_vm0, %v594_v8 }
   0xc   :  { %9 = vsyncpa [#allocation6], 0  ;;  %79 = vperm.xlu1 %586, %v49_v11   ;;  %69 = vperm.xlu0 %585, %v47_v12   ;;  %v51_v15 = vld [vmem:[%s927_s2 + $0x28] sm:$0xff]  ;;  %v50_v16 = vld [vmem:[%s927_s2 + $0x20] sm:$0xff]  ;;  %v656_v27 = vmov -inf   ;;  %v657_v28 = vmov 0.0   ;;  %v345_v37 = vlaneseq }
   0xd   :  { %v53_v17 = vld [vmem:[%s927_s2 + $0x38] sm:$0xff]  ;;  %v52_v18 = vld [vmem:[%s927_s2 + $0x30] sm:$0xff]  ;;  %v55_v19 = vld [vmem:[%s927_s2 + $0x48] sm:$0xff]  ;;  %23 = vst [vmem:[#allocation2] sm:$0x1] %v656_v27 }
   0xe   :  { %v54_v20 = vld [vmem:[%s927_s2 + $0x40] sm:$0xff]  ;;  %v57_v21 = vld [vmem:[%s927_s2 + $0x58] sm:$0xff]  ;;  %v56_v22 = vld [vmem:[%s927_s2 + $0x50] sm:$0xff]  ;;  %24 = vst [vmem:[#allocation3] sm:$0x1] %v657_v28  ;;  %v772_v41 = vshrl.u32 %v345_v37, 7 }
   0xf   :  { %v59_v23 = vld [vmem:[%s927_s2 + $0x68] sm:$0xff]  ;;  %v58_v24 = vld [vmem:[%s927_s2 + $0x60] sm:$0xff]  ;;  %v61_v25 = vld [vmem:[%s927_s2 + $0x78] sm:$0xff]  ;;  %25 = vst [vmem:[#allocation4] sm:$0x1] %v657_v28 }
  0x10   :  { %89 = vperm.xlu1 %586, %v51_v15   ;;  %84 = vperm.xlu0 %585, %v50_v16   ;;  %v60_v26 = vld [vmem:[%s927_s2 + $0x70] sm:$0xff]  ;;  %v428_v45 = vadd.s32 8, %v772_v41  ;;  %v429_v46 = vadd.s32 16, %v772_v41  ;;  %v779_v51 = vld [vmem:[%s928_s3] ss:$0 sm:$0xff]  ;;  %v430_v53 = vadd.s32 24, %v772_v41 }
  0x11   :  { %vm447_vm1 = vcmp.eq.s32.totalorder %v772_v41, %v779_v51  ;;  %v431_v60 = vadd.s32 32, %v772_v41  ;;  %v432_v4 = vadd.s32 40, %v772_v41  ;;  %v433_v10 = vadd.s32 48, %v772_v41  ;;  %s658_s3 = smov [#allocation5]  }
  0x12   :  { %566 = vmatmul.mubr.msk.bf16.gmra.mxu0 %vm194_vm0, %v595_v13  ;;  %574 = vmatmul.mubr.msk.bf16.gmra.mxu1 %vm194_vm0, %v596_v14  ;;  %vm448_vm2 = vcmp.eq.s32.totalorder %v428_v45, %v779_v51  ;;  %vm449_vm3 = vcmp.eq.s32.totalorder %v429_v46, %v779_v51  ;;  %vm450_vm4 = vcmp.eq.s32.totalorder %v430_v53, %v779_v51  ;;  %v435_v12 = vadd.s32 64, %v772_v41  ;;  %s520_s13 = sshll.u32 %s658_s3, 4  ;;  %s521_s13 = int_to_ptr.vmem [resolvable:$true] %s520_s13 }
  0x13   :  { %vm451_vm5 = vcmp.eq.s32.totalorder %v431_v60, %v779_v51  ;;  %vm452_vm6 = vcmp.eq.s32.totalorder %v432_v4, %v779_v51  ;;  %vm453_vm7 = vcmp.eq.s32.totalorder %v433_v10, %v779_v51  ;;  %v440_v4 = vadd.s32 104, %v772_v41  ;;  %s633_s14 = scalar_lea.vmem %s521_s13, 16  ;;  %s637_s15 = scalar_lea.vmem %s521_s13, 32 }
  0x14   :  { %99 = vperm.xlu1 %586, %v53_v17   ;;  %94 = vperm.xlu0 %585, %v52_v18   ;;  %vm455_vm9 = vcmp.eq.s32.totalorder %v435_v12, %v779_v51  ;;  %p634_p0 = scmp.ne.s32.totalorder %s521_s13, %s633_s14  ;;  %p638_p1 = scmp.lt.s32.totalorder %s521_s13, %s521_s13 }
  0x15   :  { %vm460_vm14 = vcmp.eq.s32.totalorder %v440_v4, %v779_v51  ;;  %p639_p2 = scmp.lt.s32.totalorder %s637_s15, %s633_s14 }
  0x17   :  { %p640_p3 = por %p639_p2, %p638_p1 }
  0x18   :  { %109 = vperm.xlu1 %586, %v55_v19   ;;  %104 = vperm.xlu0 %585, %v54_v20   ;;  %v434_v19 = vadd.s32 56, %v772_v41 }
  0x19   :  { %p641_p4 = pnand %p640_p3, %p634_p0 }
  0x1a   :  { %vm454_vm8 = vcmp.eq.s32.totalorder %v434_v19, %v779_v51 }
  0x1c   :  { %119 = vperm.xlu1 %586, %v57_v21   ;;  %114 = vperm.xlu0 %585, %v56_v22  }
  0x20   :  { %129 = vperm.xlu1 %586, %v59_v23   ;;  %124 = vperm.xlu0 %585, %v58_v24  }
  0x24   :  { %139 = vperm.xlu1 %586, %v61_v25   ;;  %134 = vperm.xlu0 %585, %v60_v26  }
  0x81   :  { %v75_v29 = vpop.permute.xlu1 %74  ;;  %v65_v30 = vpop.permute.xlu0 %64 }
  0x87   :  { %v80_v31 = vpop.permute.xlu1 %79  ;;  %v70_v32 = vpop.permute.xlu0 %69 }
  0x8b   :  { %v770_v33 = vpop.permute.xlu1 %89  ;;  %v85_v34 = vpop.permute.xlu0 %84 }
  0x8f   :  { %v100_v35 = vpop.permute.xlu1 %99  ;;  %v95_v36 = vpop.permute.xlu0 %94 }
  0x93   :  { %v110_v38 = vpop.permute.xlu1 %109  ;;  %v105_v39 = vpop.permute.xlu0 %104 }
  0x97   :  { %v120_v49 = vpop.permute.xlu1 %119  ;;  %v115_v50 = vpop.permute.xlu0 %114 }
  0x9b   :  { %v130_v5 = vpop.permute.xlu1 %129  ;;  %v125_v8 = vpop.permute.xlu0 %124 }
  0x9f   :  { %v140_v28 = vpop.permute.xlu1 %139 }
  0xca   :  { %v563_v40 = vpop.f32.mrf.mxu0  ;;  %v571_v42 = vpop.f32.mrf.mxu1 }
  0xcb   :  { %v787_v56 = vadd.f32 %v563_v40, %v75_v29  ;;  %v816_v21 = vadd.f32 %v571_v42, %v115_v50 }
  0xcc   :  { %v253_v43 = vpop.f32.mrf.mxu0  ;;  %v285_v44 = vpop.f32.mrf.mxu1 }
  0xcd   :  { %v781_v52 = vadd.f32 %v253_v43, %v65_v30  ;;  %v466_v6 = vsel %vm449_vm3, %v787_v56, 0.0  ;;  %v823_v25 = vadd.f32 %v285_v44, %v105_v39  ;;  %v436_v30 = vadd.s32 72, %v772_v41 }
  0xce   :  { %v564_v47 = vpop.f32.mrf.mxu0  ;;  %v572_v48 = vpop.f32.mrf.mxu1 }
  0xcf   :  { %v464_v61 = vsel %vm447_vm1, %v781_v52, 0.0  ;;  %v794_v62 = vadd.f32 %v564_v47, %v80_v31  ;;  %v818_v22 = vadd.f32 %v572_v48, %v120_v49  ;;  %v437_v47 = vadd.s32 80, %v772_v41 }
  0xd0   :  { %v256_v54 = vpop.f32.mrf.mxu0  ;;  %v288_v55 = vpop.f32.mrf.mxu1  ;;  %vm456_vm10 = vcmp.eq.s32.totalorder %v436_v30, %v779_v51 }
  0xd1   :  { %v789_v57 = vadd.f32 %v256_v54, %v70_v32  ;;  %v467_v13 = vsel %vm450_vm4, %v794_v62, 0.0  ;;  %v829_v29 = vadd.f32 %v288_v55, %v110_v38  ;;  %v438_v55 = vadd.s32 88, %v772_v41 }
  0xd2   :  { %v567_v58 = vpop.f32.mrf.mxu0  ;;  %v575_v59 = vpop.f32.mrf.mxu1  ;;  %vm457_vm11 = vcmp.eq.s32.totalorder %v437_v47, %v779_v51 }
  0xd3   :  { %v465_v63 = vsel %vm448_vm2, %v789_v57, 0.0  ;;  %v797_v0 = vadd.f32 %v567_v58, %v95_v36  ;;  %vm458_vm12 = vcmp.eq.s32.totalorder %v438_v55, %v779_v51 }
  0xd4   :  { %v480_v1 = vadd.f32 %v465_v63, %v464_v61  ;;  %v269_v2 = vpop.f32.mrf.mxu0  ;;  %v301_v3 = vpop.f32.mrf.mxu1  ;;  %v439_v63 = vadd.s32 96, %v772_v41 }
  0xd5   :  { %v802_v7 = vadd.f32 %v269_v2, %v85_v34  ;;  %v319_v14 = vmax.f32 %v787_v56, %v797_v0  ;;  %v470_v38 = vsel %vm453_vm7, %v797_v0, 0.0  ;;  %v846_v43 = vadd.f32 %v301_v3, %v125_v8 }
  0xd6   :  { %v481_v9 = vadd.f32 %v480_v1, %v466_v6  ;;  %v568_v11 = vpop.f32.mrf.mxu0  ;;  %v576_v16 = vpop.f32.mrf.mxu1  ;;  %v473_v2 = vsel %vm456_vm10, %v829_v29, 0.0  ;;  %v474_v6 = vsel %vm457_vm11, %v816_v21, 0.0  ;;  %vm459_vm13 = vcmp.eq.s32.totalorder %v439_v63, %v779_v51 }
  0xd7   :  { %v810_v15 = vadd.f32 %v568_v11, %v100_v35  ;;  %v317_v17 = vmax.f32 %v781_v52, %v802_v7  ;;  %v468_v23 = vsel %vm451_vm5, %v802_v7, 0.0  ;;  %v323_v31 = vmax.f32 %v319_v14, %v816_v21  ;;  %v135_v35 = vpop.permute.xlu0 %134 }
  0xd8   :  { %v482_v18 = vadd.f32 %v481_v9, %v467_v13  ;;  %v272_v20 = vpop.f32.mrf.mxu0  ;;  %v304_v34 = vpop.f32.mrf.mxu1  ;;  %v835_v37 = vadd.f32 %v576_v16, %v140_v28  ;;  %v843_v40 = vadd.f32 %v575_v59, %v135_v35  ;;  %v472_v59 = vsel %vm455_vm9, %v823_v25, 0.0  ;;  %v877_v28 = vld [vmem:[#allocation2] sm:$0x1] }
  0xd9   :  { %v320_v24 = vmax.f32 %v794_v62, %v810_v15  ;;  %v827_v27 = vadd.f32 %v272_v20, %v770_v33  ;;  %v321_v36 = vmax.f32 %v317_v17, %v823_v25  ;;  %v849_v45 = vadd.f32 %v304_v34, %v130_v5 }
  0xda   :  { %v483_v26 = vadd.f32 %v482_v18, %v468_v23  ;;  %v327_v49 = vmax.f32 %v323_v31, %v843_v40  ;;  %v471_v53 = vsel %vm454_vm8, %v810_v15, 0.0  ;;  %v441_v9 = vadd.s32 112, %v772_v41 }
  0xdb   :  { %v324_v32 = vmax.f32 %v320_v24, %v818_v22  ;;  %v318_v39 = vmax.f32 %v789_v57, %v827_v27  ;;  %v469_v33 = vsel %vm452_vm6, %v827_v27, 0.0  ;;  %v325_v50 = vmax.f32 %v321_v36, %v846_v43 }
  0xdc   :  { %v484_v42 = vadd.f32 %v483_v26, %v469_v33  ;;  %v475_v11 = vsel %vm458_vm12, %v818_v22, 0.0  ;;  %v476_v14 = vsel %vm459_vm13, %v846_v43, 0.0  ;;  %vm461_vm15 = vcmp.eq.s32.totalorder %v441_v9, %v779_v51 }
  0xdd   :  { %v328_v44 = vmax.f32 %v324_v32, %v835_v37  ;;  %v322_v46 = vmax.f32 %v318_v39, %v829_v29  ;;  %v442_v17 = vadd.s32 120, %v772_v41  ;;  %v477_v20 = vsel %vm460_vm14, %v849_v45, 0.0 }
  0xde   :  { %v485_v48 = vadd.f32 %v484_v42, %v470_v38  ;;  %v478_v24 = vsel %vm461_vm15, %v843_v40, 0.0  ;;  %v347_v32 = vsub.s32 0, %v772_v41 }
  0xdf   :  { %v326_v54 = vmax.f32 %v322_v46, %v849_v45  ;;  %v330_v60 = vmax.f32 %v327_v49, %v328_v44  ;;  %vm462_vm0 = vcmp.eq.s32.totalorder %v442_v17, %v779_v51 }
  0xe0   :  { %v486_v58 = vadd.f32 %v485_v48, %v471_v53  ;;  %v479_v34 = vsel %vm462_vm0, %v835_v37, 0.0 }
  0xe1   :  { %v329_v61 = vmax.f32 %v325_v50, %v326_v54 }
  0xe2   :  { %v487_v1 = vadd.f32 %v486_v58, %v472_v59  ;;  %v463_v59 = vld [vmem:[#allocation4] sm:$0x1] }
  0xe3   :  { %v331_v3 = vmax.f32 %v329_v61, %v330_v60 }
  0xe4   :  { %v488_v5 = vadd.f32 %v487_v1, %v473_v2 }
  0xe5   :  { %v332_v8 = vrot.slane %v331_v3, 4 }
  0xe6   :  { %v489_v10 = vadd.f32 %v488_v5, %v474_v6 }
  0xe7   :  { %v333_v12 = vmax.f32 %v331_v3, %v332_v8 }
  0xe8   :  { %v490_v13 = vadd.f32 %v489_v10, %v475_v11 }
  0xe9   :  { %v334_v16 = vrot.slane %v333_v12, 2 }
  0xea   :  { %v491_v18 = vadd.f32 %v490_v13, %v476_v14 }
  0xeb   :  { %v335_v19 = vmax.f32 %v333_v12, %v334_v16 }
  0xec   :  { %v492_v23 = vadd.f32 %v491_v18, %v477_v20 }
  0xed   :  { %v336_v26 = vrot.slane %v335_v19, 1 }
  0xee   :  { %v493_v30 = vadd.f32 %v492_v23, %v478_v24 }
  0xef   :  { %v337_v31 = vmax.f32 %v335_v19, %v336_v26 }
  0xf0   :  { %v494_v36 = vadd.f32 %v493_v30, %v479_v34 }
  0xf1   :  { %v882_v35 = vmax.f32 %v877_v28, %v337_v31 }
  0xf2   :  { %v495_v38 = vrot.slane %v494_v36, 4 }
  0xf3   :  { %v885_v39 = vrot.slane %v882_v35, %v347_v32  ;;  %421 = vst [vmem:[#allocation2] sm:$0x1] %v882_v35 }
  0xf4   :  { %v496_v49 = vadd.f32 %v495_v38, %v494_v36 }
  0xf5   :  { %v350_v51 = vsub.f32 %v781_v52, %v885_v39  ;;  %v351_v33 = vsub.f32 %v789_v57, %v885_v39  ;;  %v352_v41 = vsub.f32 %v787_v56, %v885_v39  ;;  %v353_v42 = vsub.f32 %v794_v62, %v885_v39 }
  0xf6   :  { %v354_v47 = vsub.f32 %v802_v7, %v885_v39  ;;  %v355_v52 = vsub.f32 %v827_v27, %v885_v39  ;;  %v356_v56 = vsub.f32 %v797_v0, %v885_v39  ;;  %v497_v53 = vrot.slane %v496_v49, 2 }
  0xf7   :  { %v366_v44 = vmul.f32 1.442695, %v350_v51  ;;  %v368_v46 = vmul.f32 1.442695, %v351_v33  ;;  %v370_v48 = vmul.f32 1.442695, %v352_v41  ;;  %v357_v62 = vsub.f32 %v810_v15, %v885_v39 }
  0xf8   :  { %v372_v57 = vmul.f32 1.442695, %v353_v42  ;;  %v374_v50 = vmul.f32 1.442695, %v354_v47  ;;  %v376_v54 = vmul.f32 1.442695, %v355_v52  ;;  %v498_v7 = vadd.f32 %v497_v53, %v496_v49 }
  0xf9   :  { %597 = vpow2.f32 %v366_v44  ;;  %v358_v55 = vsub.f32 %v823_v25, %v885_v39  ;;  %v378_v58 = vmul.f32 1.442695, %v356_v56  ;;  %v359_v60 = vsub.f32 %v829_v29, %v885_v39 }
  0xfa   :  { %599 = vpow2.f32 %v368_v46  ;;  %v499_v27 = vrot.slane %v498_v7, 1  ;;  %v380_v0 = vmul.f32 1.442695, %v357_v62  ;;  %v360_v63 = vsub.f32 %v816_v21, %v885_v39 }
  0xfb   :  { %601 = vpow2.f32 %v370_v48  ;;  %v382_v15 = vmul.f32 1.442695, %v358_v55  ;;  %v361_v25 = vsub.f32 %v818_v22, %v885_v39  ;;  %v384_v3 = vmul.f32 1.442695, %v359_v60  ;;  %v507_v60 = vld [vmem:[#allocation2] sm:$0x1] }
  0xfc   :  { %603 = vpow2.f32 %v372_v57  ;;  %v500_v61 = vadd.f32 %v499_v27, %v498_v7  ;;  %v362_v29 = vsub.f32 %v846_v43, %v885_v39  ;;  %v386_v5 = vmul.f32 1.442695, %v360_v63 }
  0xfd   :  { %605 = vpow2.f32 %v374_v50  ;;  %v363_v21 = vsub.f32 %v849_v45, %v885_v39  ;;  %v388_v9 = vmul.f32 1.442695, %v361_v25  ;;  %v364_v22 = vsub.f32 %v843_v40, %v885_v39 }
  0xfe   :  { %607 = vpow2.f32 %v376_v54  ;;  %v501_v1 = vadd.f32 %v500_v61, %v463_v59  ;;  %v390_v12 = vmul.f32 1.442695, %v362_v29  ;;  %v365_v43 = vsub.f32 %v835_v37, %v885_v39 }
  0xff   :  { %609 = vpow2.f32 %v378_v58  ;;  %v392_v16 = vmul.f32 1.442695, %v363_v21  ;;  %v394_v45 = vmul.f32 1.442695, %v364_v22  ;;  %v339_v37 = vsub.f32 %v877_v28, %v882_v35  ;;  %v342_v35 = vld [vmem:[#allocation3] sm:$0x1] }
 0x100   :  { %611 = vpow2.f32 %v380_v0  ;;  %502 = vst [vmem:[#allocation4] sm:$0x1] %v501_v1  ;;  %v396_v23 = vmul.f32 1.442695, %v365_v43 }
 0x101   :  { %613 = vpow2.f32 %v382_v15  ;;  %v340_v33 = vmul.f32 1.442695, %v339_v37 }
 0x102   :  { %615 = vpow2.f32 %v384_v3 }
 0x103   :  { %617 = vpow2.f32 %v386_v5 }
 0x104   :  { %619 = vpow2.f32 %v388_v9 }
 0x105   :  { %621 = vpow2.f32 %v390_v12 }
 0x106   :  { %v598_v2 = vpop.eup %597  ;;  %623 = vpow2.f32 %v392_v16 }
 0x107   :  { %v600_v4 = vpop.eup %599  ;;  %625 = vpow2.f32 %v394_v45  ;;  %v506_v61 = vld [vmem:[#allocation4] sm:$0x1] }
 0x108   :  { %v398_v6 = vadd.f32 %v600_v4, %v598_v2  ;;  %v602_v8 = vpop.eup %601  ;;  %627 = vpow2.f32 %v396_v23 }
 0x109   :  { %v604_v11 = vpop.eup %603  ;;  %629 = vpow2.f32 %v340_v33 }
 0x10a   :  { %v399_v10 = vadd.f32 %v602_v8, %v398_v6  ;;  %v606_v14 = vpop.eup %605 }
 0x10b   :  { %v608_v18 = vpop.eup %607 }
 0x10c   :  { %v400_v13 = vadd.f32 %v604_v11, %v399_v10  ;;  %v610_v20 = vpop.eup %609 }
 0x10d   :  { %v612_v26 = vpop.eup %611 }
 0x10e   :  { %v401_v17 = vadd.f32 %v606_v14, %v400_v13  ;;  %v614_v30 = vpop.eup %613 }
 0x10f   :  { %v616_v32 = vpop.eup %615 }
 0x110   :  { %v402_v19 = vadd.f32 %v608_v18, %v401_v17  ;;  %v618_v36 = vpop.eup %617 }
 0x111   :  { %v620_v51 = vpop.eup %619 }
 0x112   :  { %v403_v24 = vadd.f32 %v610_v20, %v402_v19  ;;  %v622_v38 = vpop.eup %621 }
 0x113   :  { %v624_v44 = vpop.eup %623 }
 0x114   :  { %v404_v40 = vadd.f32 %v612_v26, %v403_v24  ;;  %v626_v47 = vpop.eup %625 }
 0x115   :  { %v628_v49 = vpop.eup %627 }
 0x116   :  { %v405_v31 = vadd.f32 %v614_v30, %v404_v40  ;;  %v630_v28 = vpop.eup %629 }
 0x117   :  { %v343_v54 = vmul.f32 %v630_v28, %v342_v35 }
 0x118   :  { %v406_v34 = vadd.f32 %v616_v32, %v405_v31 }
 0x11a   :  { %v407_v39 = vadd.f32 %v618_v36, %v406_v34 }
 0x11c   :  { %v408_v41 = vadd.f32 %v620_v51, %v407_v39 }
 0x11e   :  { %v409_v42 = vadd.f32 %v622_v38, %v408_v41 }
 0x120   :  { %v410_v46 = vadd.f32 %v624_v44, %v409_v42 }
 0x122   :  { %v411_v48 = vadd.f32 %v626_v47, %v410_v46 }
 0x124   :  { %v412_v52 = vadd.f32 %v628_v49, %v411_v48 }
 0x126   :  { %v413_v57 = vrot.slane %v412_v52, 4 }
 0x128   :  { %v414_v56 = vadd.f32 %v413_v57, %v412_v52 }
 0x12a   :  { %v415_v50 = vrot.slane %v414_v56, 2 }
 0x12c   :  { %v416_v53 = vadd.f32 %v415_v50, %v414_v56 }
 0x12e   :  { %v417_v62 = vrot.slane %v416_v53, 1 }
 0x130   :  { %v418_v7 = vadd.f32 %v417_v62, %v416_v53 }
 0x132   :  { %v419_v55 = vadd.f32 %v418_v7, %v343_v54 }
 0x134   :  { %420 = vst [vmem:[#allocation3] sm:$0x1] %v419_v55 }
 0x13b   :  { %v508_v58 = vld [vmem:[#allocation3] sm:$0x1] }
 0x13c   :  { %631 = vlog2.f32 %v508_v58 }
 0x149   :  { %v632_v27 = vpop.eup %631 }
 0x14a   :  { %v510_v59 = vmul.f32 0.6931472, %v632_v27 }
 0x14c   :  { %v511_v0 = vadd.f32 %v510_v59, %v507_v60 }
 0x14e   :  { %v512_v63 = vsub.f32 %v506_v61, %v511_v0 }
 0x150   :  { %513 = vst [vmem:[#allocation5] sm:$0x1] %v512_v63 }
 0x151   :  { %644 = shalt.err (!%p641_p4)
}
 0x152   :  { %523 = dma.vmem_to_hbm [thread:$0]  %s521_s13, 16, %s929_s4, [#allocation6]  }
 0x153   :  { %653 = dma.done.wait [#allocation6], 16  }
 0x154   :  { %654 = vsyncadd [#allocation6], 4294967280 }
 0x155   :  { %527 = vsyncpa [#allocation6], 1 }

</bundles_post_ra>
